<compile_context>
chip_gen: v5e
topology: v5e:2x2
jax: 0.10.0
libtpu: 0.0.40
codegen_flags: <defaults>
</compile_context>

<pallas_src>
import functools

import jax
import jax.numpy as jnp
from jax.experimental import pallas as pl
from jax.experimental.pallas import tpu as pltpu

LANE = 128
SUBLANE_BF16 = 16


def _round_up(n, m):
    return ((n + m - 1) // m) * m


def _device_kind():
    try:
        return jax.devices()[0].device_kind.lower()
    except Exception:
        return ""


def _vmem_budget_bytes():
    """Physical VMEM minus ~8 MiB headroom, per generation."""
    cap = None
    try:
        info = pltpu.get_tpu_info()
        cap = int(getattr(info, "vmem_capacity_bytes", 0)) or None
    except Exception:
        cap = None
    if cap is None:
        cap = (64 << 20) if "v7" in _device_kind() else (128 << 20)
    return cap - (8 << 20)


def _probe_pipeline_mode():
    """True if this JAX build accepts pipeline_mode=pl.Buffered(k) on BlockSpec."""
    if not hasattr(pl, "Buffered"):
        return False
    try:
        pl.BlockSpec((8, 128), lambda i: (0, 0), pipeline_mode=pl.Buffered(1))
        return True
    except Exception:
        return False


_HAS_PIPELINE_MODE = _probe_pipeline_mode()


# ----------------------------- kernel body ----------------------------------

def _mlp_kernel(n_layers, out_pads, relu_mask, ew_bf16, x_ref, b_ref, *rest):
    """rest = (w0, ..., w_{L-1}, out_ref).

    One grid step runs the whole forward pass for a (TM, .) batch tile; the
    activation stays resident in VMEM/vregs between layers.
    """
    w_refs = rest[:n_layers]
    out_ref = rest[n_layers]

    h = x_ref[...]                                    # bf16 (TM, in_pad)
    for i in range(n_layers):
        # bf16 MXU operands, f32 accumulation (astype is a no-op on layer 0).
        acc = jnp.dot(h.astype(jnp.bfloat16), w_refs[i][...],
                      preferred_element_type=jnp.float32)
        b = b_ref[i:i + 1, 0:out_pads[i]]             # (1, out_pad_i) f32
        if relu_mask[i]:
            if ew_bf16:
                # v6e/v7x: bias-add + ReLU in bf16 (halves elementwise bytes);
                # also removes the separate f32->bf16 cast before the next dot.
                h = jnp.maximum(acc.astype(jnp.bfloat16) + b.astype(jnp.bfloat16), 0.0)
            else:
                h = jnp.maximum(acc + b, 0.0)         # v5e-safe f32 elementwise
        else:
            h = acc + b                               # final layer: f32 bias add
    out_ref[...] = h.astype(out_ref.dtype)            # lane-dense store


# ----------------------------- wrapper ---------------------------------------

class ComplexANNPallas:
    """Params are padded / cast to bf16 ONCE here; forward only pads x."""

    def __init__(self, weights, biases, *, elementwise_bf16=None,
                 out_dtype=jnp.float32):
        assert len(weights) == len(biases) >= 1
        self.n_layers = len(weights)
        self.dims = [int(weights[0].shape[0])] + [int(w.shape[1]) for w in weights]
        for i, (w, b) in enumerate(zip(weights, biases)):
            assert w.shape == (self.dims[i], self.dims[i + 1])
            assert b.shape == (self.dims[i + 1],)
        self.pads = [_round_up(d, LANE) for d in self.dims]
        self.out_dtype = out_dtype
        self._kind = _device_kind()
        if elementwise_bf16 is None:
            elementwise_bf16 = ("v6" in self._kind) or ("v7" in self._kind)
        self.ew_bf16 = bool(elementwise_bf16)
        self._budget = _vmem_budget_bytes()

        # one-time padding + bf16 cast (zero padding is exact)
        w_pads = []
        for i, w in enumerate(weights):
            wp = jnp.zeros((self.pads[i], self.pads[i + 1]), jnp.bfloat16)
            wp = wp.at[:w.shape[0], :w.shape[1]].set(
                jnp.asarray(w, jnp.float32).astype(jnp.bfloat16))
            w_pads.append(wp)
        self.w_pads = w_pads

        self.d_max = max(self.pads[1:])
        b_pack = jnp.zeros((self.n_layers, self.d_max), jnp.float32)
        for i, b in enumerate(biases):
            b_pack = b_pack.at[i, :b.shape[0]].set(jnp.asarray(b, jnp.float32))
        self.b_pack = b_pack

        self.param_bytes = (sum(int(w.size) * 2 for w in w_pads)
                            + int(b_pack.size) * 4)

    # -- VMEM accounting ------------------------------------------------------

    def _fused_vmem_estimate(self, tm, param_bufs, x_bufs):
        pads = self.pads
        out_bytes = jnp.dtype(self.out_dtype).itemsize
        return int(self.param_bytes * param_bufs
                   + x_bufs * tm * pads[0] * 2            # bf16 x tiles
                   + 2 * tm * pads[-1] * out_bytes        # out tiles
                   + 2 * tm * max(pads) * 4)              # widest live f32 activation

    def _select_tm(self, B, param_bufs):
        b_tile = _round_up(max(B, 1), SUBLANE_BF16)
        if b_tile <= 128:
            return b_tile
        if "v7" in self._kind:
            # tm=256 only if it still gives >= 2 grid steps (both TensorCores busy)
            cand = ([256] if B >= 512 else []) + [128]
        else:
            cand = (([512] if B >= 2048 else [])
                    + ([256] if B >= 512 else []) + [128])
        for tm in cand:
            if self._fused_vmem_estimate(tm, param_bufs, 2) <= self._budget:
                return tm
        return 128

    # -- forward --------------------------------------------------------------

    def __call__(self, x, *, tm=None, force_streaming=False):
        param_bufs_min = 1 if _HAS_PIPELINE_MODE else 2
        min_est = self._fused_vmem_estimate(SUBLANE_BF16, param_bufs_min, 2)
        if force_streaming or min_est > self._budget:
            return self._forward_streaming(x)
        return self._forward_fused(x, tm=tm)

    def _forward_fused(self, x, tm=None):
        B = x.shape[0]
        assert x.shape[1] == self.dims[0]
        pads, L = self.pads, self.n_layers
        if tm is None:
            tm = self._select_tm(B, 1 if _HAS_PIPELINE_MODE else 2)
        B_pad = _round_up(max(B, 1), tm)
        n_tiles = B_pad // tm

        # only the activation is padded per call
        x_pad = jnp.zeros((B_pad, pads[0]), jnp.bfloat16)
        x_pad = x_pad.at[:B, :self.dims[0]].set(x.astype(jnp.bfloat16))

        relu_mask = tuple([True] * (L - 1) + [False])
        kernel = functools.partial(_mlp_kernel, L, tuple(pads[1:]), relu_mask,
                                   self.ew_bf16)

        layer_mults = sum(pads[i] * pads[i + 1] for i in range(L))
        flops = int(2 * B_pad * layer_mults)
        out_bytes = jnp.dtype(self.out_dtype).itemsize
        bytes_accessed = int(x_pad.size * 2 + self.param_bytes
                             + B_pad * pads[-1] * out_bytes)
        shallow_narrow = layer_mults <= 4 * 256 * 256

        def build_and_call(use_pm):
            pbuf = 1 if use_pm else 2
            xbuf = 3 if (use_pm and n_tiles >= 3 and shallow_narrow) else 2

            def spec(shape, imap, nbuf):
                if use_pm and nbuf != 2:
                    return pl.BlockSpec(shape, imap, pipeline_mode=pl.Buffered(nbuf))
                return pl.BlockSpec(shape, imap)

            in_specs = [spec((tm, pads[0]), lambda i: (i, 0), xbuf),        # x tile
                        spec((L, self.d_max), lambda i: (0, 0), pbuf)]      # bias slab
            for li in range(L):                                             # resident W
                in_specs.append(spec((pads[li], pads[li + 1]), lambda i: (0, 0), pbuf))
            out_spec = pl.BlockSpec((tm, pads[-1]), lambda i: (i, 0))

            est = self._fused_vmem_estimate(tm, pbuf, xbuf)
            vmem_limit = int(min(max(est + (4 << 20), 16 << 20), self._budget))

            return pl.pallas_call(
                kernel,
                out_shape=jax.ShapeDtypeStruct((B_pad, pads[-1]), self.out_dtype),
                grid=(n_tiles,),
                in_specs=in_specs,
                out_specs=out_spec,
                compiler_params=pltpu.CompilerParams(
                    dimension_semantics=("parallel",),
                    vmem_limit_bytes=vmem_limit),
                cost_estimate=pl.CostEstimate(
                    flops=flops, transcendentals=0, bytes_accessed=bytes_accessed),
            )(x_pad, self.b_pack, *self.w_pads)

        if _HAS_PIPELINE_MODE:
            try:
                out_pad = build_and_call(True)
            except Exception:
                out_pad = build_and_call(False)   # fall back to default buffering
        else:
            out_pad = build_and_call(False)

        return out_pad[:B, :self.dims[-1]]

    def _forward_streaming(self, x):
        """Layer-by-layer fallback when the resident parameter set exceeds VMEM
        (relevant on v7x's 64 MiB). One layer's weight is resident per call;
        hidden activations round-trip HBM in bf16."""
        # TODO(synk): chunk a single layer's weight over K/N with pltpu.emit_pipeline
        #             if one layer alone exceeds the VMEM budget.
        B = x.shape[0]
        assert x.shape[1] == self.dims[0]
        pads, L = self.pads, self.n_layers
        tm = min(128, _round_up(max(B, 1), SUBLANE_BF16))
        B_pad = _round_up(max(B, 1), tm)
        n_tiles = B_pad // tm

        h = jnp.zeros((B_pad, pads[0]), jnp.bfloat16)
        h = h.at[:B, :self.dims[0]].set(x.astype(jnp.bfloat16))

        for li in range(L):
            last = (li == L - 1)
            out_dt = self.out_dtype if last else jnp.bfloat16
            out_bytes = jnp.dtype(out_dt).itemsize
            kernel = functools.partial(_mlp_kernel, 1, (pads[li + 1],),
                                       (not last,), self.ew_bf16)
            b_row = self.b_pack[li:li + 1, :pads[li + 1]]      # (1, out_pad) f32
            est = (2 * int(self.w_pads[li].size) * 2 + 2 * int(b_row.size) * 4
                   + 2 * tm * pads[li] * 2
                   + 2 * tm * pads[li + 1] * out_bytes
                   + 2 * tm * pads[li + 1] * 4)
            vmem_limit = int(min(max(est + (4 << 20), 16 << 20), self._budget))
            h = pl.pallas_call(
                kernel,
                out_shape=jax.ShapeDtypeStruct((B_pad, pads[li + 1]), out_dt),
                grid=(n_tiles,),
                in_specs=[pl.BlockSpec((tm, pads[li]), lambda i: (i, 0)),
                          pl.BlockSpec((1, pads[li + 1]), lambda i: (0, 0)),
                          pl.BlockSpec((pads[li], pads[li + 1]), lambda i: (0, 0))],
                out_specs=pl.BlockSpec((tm, pads[li + 1]), lambda i: (i, 0)),
                compiler_params=pltpu.CompilerParams(
                    dimension_semantics=("parallel",),
                    vmem_limit_bytes=vmem_limit),
            )(h, b_row, self.w_pads[li])

        return h[:B, :self.dims[-1]]


# ----------------------------- init & references -----------------------------

def init_params(key, input_size, hidden_sizes, output_size):
    """Mirrors torch.nn.Linear default U(-1/sqrt(in), 1/sqrt(in)); weights (in, out)."""
    dims = [input_size] + list(hidden_sizes) + [output_size]
    weights, biases = [], []
    for i in range(len(dims) - 1):
        fan_in, fan_out = dims[i], dims[i + 1]
        key, wk, bk = jax.random.split(key, 3)
        bound = 1.0 / jnp.sqrt(fan_in)
        weights.append(jax.random.uniform(wk, (fan_in, fan_out), jnp.float32,
                                          -bound, bound))
        biases.append(jax.random.uniform(bk, (fan_out,), jnp.float32, -bound, bound))
    return weights, biases


def reference_forward_f32(x, weights, biases):
    """Plain f32 reference with torch forward semantics."""
    h = x
    n = len(weights)
    for i in range(n):
        h = h @ weights[i] + biases[i]
        if i < n - 1:
            h = jnp.maximum(h, 0.0)
    return h


def reference_forward_mixed(x, weights, biases, *, ew_bf16):
    """Same mixed precision as the kernel: bf16 MXU operands, f32 accumulation,
    elementwise in bf16 (v6e/v7x) or f32 (v5e) on hidden layers, f32 final bias."""
    h = x.astype(jnp.bfloat16)
    n = len(weights)
    for i in range(n):
        acc = jnp.dot(h.astype(jnp.bfloat16), weights[i].astype(jnp.bfloat16),
                      preferred_element_type=jnp.float32)
        b = biases[i].astype(jnp.float32)
        if i < n - 1:
            if ew_bf16:
                h = jnp.maximum(acc.astype(jnp.bfloat16) + b.astype(jnp.bfloat16), 0.0)
            else:
                h = jnp.maximum(acc + b, 0.0)
        else:
            h = acc + b
    return h.astype(jnp.float32)


# ----------------------------- main ------------------------------------------

if __name__ == "__main__":
    # Shapes consistent with the module: batch=8, input=32, hidden=[64, 48], out=16
    batch = 8
    input_size = 32
    hidden_sizes = [64, 48]
    output_size = 16

    key = jax.random.PRNGKey(0)
    key, xk = jax.random.split(key)
    x = jax.random.normal(xk, (batch, input_size), jnp.float32)
    weights, biases = init_params(key, input_size, hidden_sizes, output_size)

    model = ComplexANNPallas(weights, biases)   # params padded / cast once here

    # fused path, tiny batch (tm adapts down to 16 rows)
    out = jax.block_until_ready(model(x))
    assert out.shape == (batch, output_size), out.shape

    ref_mix = reference_forward_mixed(x, weights, biases, ew_bf16=model.ew_bf16)
    assert jnp.allclose(out, ref_mix, atol=2e-2, rtol=2e-2), \
        f"max abs err vs mixed-precision ref {jnp.max(jnp.abs(out - ref_mix))}"

    ref_f32 = reference_forward_f32(x, weights, biases)
    assert jnp.allclose(out, ref_f32, atol=1e-1, rtol=1e-1), \
        f"max abs err vs f32 ref {jnp.max(jnp.abs(out - ref_f32))}"

    # streaming fallback path (forced, to verify it compiles & matches)
    out_s = jax.block_until_ready(model(x, force_streaming=True))
    assert jnp.allclose(out_s, ref_mix, atol=2e-2, rtol=2e-2), \
        f"streaming path max abs err {jnp.max(jnp.abs(out_s - ref_mix))}"

    # larger batch -> multi-tile 'parallel' grid
    key, xk2 = jax.random.split(key)
    x2 = jax.random.normal(xk2, (192, input_size), jnp.float32)
    out2 = jax.block_until_ready(model(x2))
    ref2 = reference_forward_mixed(x2, weights, biases, ew_bf16=model.ew_bf16)
    assert out2.shape == (192, output_size)
    assert jnp.allclose(out2, ref2, atol=2e-2, rtol=2e-2), \
        f"large-batch max abs err {jnp.max(jnp.abs(out2 - ref2))}"

    print("KERNEL_OK")
</pallas_src>

<mosaic_0001>
module attributes {stable_mosaic.version = 11 : i64} {
  func.func @_mlp_kernel(%arg0: i32, %arg1: memref<16x128xbf16, #tpu.memory_space<vmem>>, %arg2: memref<3x128xf32, #tpu.memory_space<vmem>>, %arg3: memref<128x128xbf16, #tpu.memory_space<vmem>>, %arg4: memref<128x128xbf16, #tpu.memory_space<vmem>>, %arg5: memref<128x128xbf16, #tpu.memory_space<vmem>>, %arg6: memref<16x128xf32, #tpu.memory_space<vmem>>) attributes {dimension_semantics = [#tpu.dimension_semantics<parallel>], iteration_bounds = array<i64: 1>, scalar_prefetch = 0 : i64, scratch_operands = 0 : i64, tpu.core_type = #tpu.core_type<tc>, window_params = [{transform_indices = @transform_0, window_bounds = array<i64: 16, 128>}, {pipeline_mode = #tpu.pipeline_mode<synchronous>, transform_indices = @transform_1, window_bounds = array<i64: 3, 128>}, {pipeline_mode = #tpu.pipeline_mode<synchronous>, transform_indices = @transform_2, window_bounds = array<i64: 128, 128>}, {pipeline_mode = #tpu.pipeline_mode<synchronous>, transform_indices = @transform_3, window_bounds = array<i64: 128, 128>}, {pipeline_mode = #tpu.pipeline_mode<synchronous>, transform_indices = @transform_4, window_bounds = array<i64: 128, 128>}, {transform_indices = @transform_5, window_bounds = array<i64: 16, 128>}]} {
    %c0 = arith.constant 0 : index
    %c0_0 = arith.constant 0 : index
    %0 = vector.load %arg1[%c0, %c0_0] : memref<16x128xbf16, #tpu.memory_space<vmem>>, vector<16x128xbf16>
    %c0_1 = arith.constant 0 : index
    %c0_2 = arith.constant 0 : index
    %1 = vector.load %arg3[%c0_1, %c0_2] : memref<128x128xbf16, #tpu.memory_space<vmem>>, vector<128x128xbf16>
    %cst = arith.constant dense<0.000000e+00> : vector<16x128xf32>
    %2 = tpu.matmul %0, %1, %cst {dimension_numbers = #tpu.dot_dimension_numbers<[1], [0], [0], [1], [0, 0, 1, 1], [], []>} : vector<16x128xbf16>, vector<128x128xbf16>, vector<16x128xf32> -> vector<16x128xf32>
    %c0_3 = arith.constant 0 : index
    %c0_4 = arith.constant 0 : index
    %3 = vector.load %arg2[%c0_3, %c0_4] : memref<3x128xf32, #tpu.memory_space<vmem>>, vector<1x128xf32>
    %4 = vector.broadcast %3 : vector<1x128xf32> to vector<16x128xf32>
    %5 = arith.addf %2, %4 : vector<16x128xf32>
    %cst_5 = arith.constant 0.000000e+00 : f32
    %6 = vector.broadcast %cst_5 : f32 to vector<16x128xf32>
    %7 = arith.maximumf %5, %6 : vector<16x128xf32>
    %8 = arith.truncf %7 : vector<16x128xf32> to vector<16x128xbf16>
    %c0_6 = arith.constant 0 : index
    %c0_7 = arith.constant 0 : index
    %9 = vector.load %arg4[%c0_6, %c0_7] : memref<128x128xbf16, #tpu.memory_space<vmem>>, vector<128x128xbf16>
    %cst_8 = arith.constant dense<0.000000e+00> : vector<16x128xf32>
    %10 = tpu.matmul %8, %9, %cst_8 {dimension_numbers = #tpu.dot_dimension_numbers<[1], [0], [0], [1], [0, 0, 1, 1], [], []>} : vector<16x128xbf16>, vector<128x128xbf16>, vector<16x128xf32> -> vector<16x128xf32>
    %c1 = arith.constant 1 : index
    %c0_9 = arith.constant 0 : index
    %11 = vector.load %arg2[%c1, %c0_9] : memref<3x128xf32, #tpu.memory_space<vmem>>, vector<1x128xf32>
    %12 = vector.broadcast %11 : vector<1x128xf32> to vector<16x128xf32>
    %13 = arith.addf %10, %12 : vector<16x128xf32>
    %cst_10 = arith.constant 0.000000e+00 : f32
    %14 = vector.broadcast %cst_10 : f32 to vector<16x128xf32>
    %15 = arith.maximumf %13, %14 : vector<16x128xf32>
    %16 = arith.truncf %15 : vector<16x128xf32> to vector<16x128xbf16>
    %c0_11 = arith.constant 0 : index
    %c0_12 = arith.constant 0 : index
    %17 = vector.load %arg5[%c0_11, %c0_12] : memref<128x128xbf16, #tpu.memory_space<vmem>>, vector<128x128xbf16>
    %cst_13 = arith.constant dense<0.000000e+00> : vector<16x128xf32>
    %18 = tpu.matmul %16, %17, %cst_13 {dimension_numbers = #tpu.dot_dimension_numbers<[1], [0], [0], [1], [0, 0, 1, 1], [], []>} : vector<16x128xbf16>, vector<128x128xbf16>, vector<16x128xf32> -> vector<16x128xf32>
    %c2 = arith.constant 2 : index
    %c0_14 = arith.constant 0 : index
    %19 = vector.load %arg2[%c2, %c0_14] : memref<3x128xf32, #tpu.memory_space<vmem>>, vector<1x128xf32>
    %20 = vector.broadcast %19 : vector<1x128xf32> to vector<16x128xf32>
    %21 = arith.addf %18, %20 : vector<16x128xf32>
    %c0_15 = arith.constant 0 : index
    %c0_16 = arith.constant 0 : index
    %22 = vector.load %arg6[%c0_15, %c0_16] : memref<16x128xf32, #tpu.memory_space<vmem>>, vector<16x128xf32>
    tpu.vector_store %arg6[%c0_15, %c0_16], %21 {strides = array<i32>} : memref<16x128xf32, #tpu.memory_space<vmem>>, vector<16x128xf32>,
    return
  }
  func.func @transform_0(%arg0: i32) -> (i32, i32) {
    %c0_i32 = arith.constant 0 : i32
    %c0_i32_0 = arith.constant 0 : i32
    return %arg0, %c0_i32 : i32, i32
  }
  func.func @transform_1(%arg0: i32) -> (i32, i32) {
    %c0_i32 = arith.constant 0 : i32
    %c0_i32_0 = arith.constant 0 : i32
    %c0_i32_1 = arith.constant 0 : i32
    return %c0_i32, %c0_i32_0 : i32, i32
  }
  func.func @transform_2(%arg0: i32) -> (i32, i32) {
    %c0_i32 = arith.constant 0 : i32
    %c0_i32_0 = arith.constant 0 : i32
    %c0_i32_1 = arith.constant 0 : i32
    return %c0_i32, %c0_i32_0 : i32, i32
  }
  func.func @transform_3(%arg0: i32) -> (i32, i32) {
    %c0_i32 = arith.constant 0 : i32
    %c0_i32_0 = arith.constant 0 : i32
    %c0_i32_1 = arith.constant 0 : i32
    return %c0_i32, %c0_i32_0 : i32, i32
  }
  func.func @transform_4(%arg0: i32) -> (i32, i32) {
    %c0_i32 = arith.constant 0 : i32
    %c0_i32_0 = arith.constant 0 : i32
    %c0_i32_1 = arith.constant 0 : i32
    return %c0_i32, %c0_i32_0 : i32, i32
  }
  func.func @transform_5(%arg0: i32) -> (i32, i32) {
    %c0_i32 = arith.constant 0 : i32
    %c0_i32_0 = arith.constant 0 : i32
    return %arg0, %c0_i32 : i32, i32
  }
}

module attributes {stable_mosaic.version = 11 : i64} {
  func.func @_mlp_kernel(%arg0: i32, %arg1: memref<16x128xbf16, #tpu.memory_space<vmem>>, %arg2: memref<3x128xf32, #tpu.memory_space<vmem>>, %arg3: memref<128x128xbf16, #tpu.memory_space<vmem>>, %arg4: memref<128x128xbf16, #tpu.memory_space<vmem>>, %arg5: memref<128x128xbf16, #tpu.memory_space<vmem>>, %arg6: memref<16x128xf32, #tpu.memory_space<vmem>>) attributes {dimension_semantics = [#tpu.dimension_semantics<parallel>], iteration_bounds = array<i64: 1>, scalar_prefetch = 0 : i64, scratch_operands = 0 : i64, tpu.core_type = #tpu.core_type<tc>, window_params = [{transform_indices = @transform_0, window_bounds = array<i64: 16, 128>}, {pipeline_mode = #tpu.pipeline_mode<synchronous>, transform_indices = @transform_1, window_bounds = array<i64: 3, 128>}, {pipeline_mode = #tpu.pipeline_mode<synchronous>, transform_indices = @transform_2, window_bounds = array<i64: 128, 128>}, {pipeline_mode = #tpu.pipeline_mode<synchronous>, transform_indices = @transform_3, window_bounds = array<i64: 128, 128>}, {pipeline_mode = #tpu.pipeline_mode<synchronous>, transform_indices = @transform_4, window_bounds = array<i64: 128, 128>}, {transform_indices = @transform_5, window_bounds = array<i64: 16, 128>}]} {
    %c0 = arith.constant 0 : index
    %c0_0 = arith.constant 0 : index
    %0 = vector.load %arg1[%c0, %c0_0] : memref<16x128xbf16, #tpu.memory_space<vmem>>, vector<16x128xbf16>
    %c0_1 = arith.constant 0 : index
    %c0_2 = arith.constant 0 : index
    %1 = vector.load %arg3[%c0_1, %c0_2] : memref<128x128xbf16, #tpu.memory_space<vmem>>, vector<128x128xbf16>
    %cst = arith.constant dense<0.000000e+00> : vector<16x128xf32>
    %2 = tpu.matmul %0, %1, %cst {dimension_numbers = #tpu.dot_dimension_numbers<[1], [0], [0], [1], [0, 0, 1, 1], [], []>} : vector<16x128xbf16>, vector<128x128xbf16>, vector<16x128xf32> -> vector<16x128xf32>
    %c0_3 = arith.constant 0 : index
    %c0_4 = arith.constant 0 : index
    %3 = vector.load %arg2[%c0_3, %c0_4] : memref<3x128xf32, #tpu.memory_space<vmem>>, vector<1x128xf32>
    %4 = vector.broadcast %3 : vector<1x128xf32> to vector<16x128xf32>
    %5 = arith.addf %2, %4 : vector<16x128xf32>
    %cst_5 = arith.constant 0.000000e+00 : f32
    %6 = vector.broadcast %cst_5 : f32 to vector<16x128xf32>
    %7 = arith.maximumf %5, %6 : vector<16x128xf32>
    %8 = arith.truncf %7 : vector<16x128xf32> to vector<16x128xbf16>
    %c0_6 = arith.constant 0 : index
    %c0_7 = arith.constant 0 : index
    %9 = vector.load %arg4[%c0_6, %c0_7] : memref<128x128xbf16, #tpu.memory_space<vmem>>, vector<128x128xbf16>
    %cst_8 = arith.constant dense<0.000000e+00> : vector<16x128xf32>
    %10 = tpu.matmul %8, %9, %cst_8 {dimension_numbers = #tpu.dot_dimension_numbers<[1], [0], [0], [1], [0, 0, 1, 1], [], []>} : vector<16x128xbf16>, vector<128x128xbf16>, vector<16x128xf32> -> vector<16x128xf32>
    %c1 = arith.constant 1 : index
    %c0_9 = arith.constant 0 : index
    %11 = vector.load %arg2[%c1, %c0_9] : memref<3x128xf32, #tpu.memory_space<vmem>>, vector<1x128xf32>
    %12 = vector.broadcast %11 : vector<1x128xf32> to vector<16x128xf32>
    %13 = arith.addf %10, %12 : vector<16x128xf32>
    %cst_10 = arith.constant 0.000000e+00 : f32
    %14 = vector.broadcast %cst_10 : f32 to vector<16x128xf32>
    %15 = arith.maximumf %13, %14 : vector<16x128xf32>
    %16 = arith.truncf %15 : vector<16x128xf32> to vector<16x128xbf16>
    %c0_11 = arith.constant 0 : index
    %c0_12 = arith.constant 0 : index
    %17 = vector.load %arg5[%c0_11, %c0_12] : memref<128x128xbf16, #tpu.memory_space<vmem>>, vector<128x128xbf16>
    %cst_13 = arith.constant dense<0.000000e+00> : vector<16x128xf32>
    %18 = tpu.matmul %16, %17, %cst_13 {dimension_numbers = #tpu.dot_dimension_numbers<[1], [0], [0], [1], [0, 0, 1, 1], [], []>} : vector<16x128xbf16>, vector<128x128xbf16>, vector<16x128xf32> -> vector<16x128xf32>
    %c2 = arith.constant 2 : index
    %c0_14 = arith.constant 0 : index
    %19 = vector.load %arg2[%c2, %c0_14] : memref<3x128xf32, #tpu.memory_space<vmem>>, vector<1x128xf32>
    %20 = vector.broadcast %19 : vector<1x128xf32> to vector<16x128xf32>
    %21 = arith.addf %18, %20 : vector<16x128xf32>
    %c0_15 = arith.constant 0 : index
    %c0_16 = arith.constant 0 : index
    %22 = vector.load %arg6[%c0_15, %c0_16] : memref<16x128xf32, #tpu.memory_space<vmem>>, vector<16x128xf32>
    tpu.vector_store %arg6[%c0_15, %c0_16], %21 {strides = array<i32>} : memref<16x128xf32, #tpu.memory_space<vmem>>, vector<16x128xf32>,
    return
  }
  func.func @transform_0(%arg0: i32) -> (i32, i32) {
    %c0_i32 = arith.constant 0 : i32
    %c0_i32_0 = arith.constant 0 : i32
    return %arg0, %c0_i32 : i32, i32
  }
  func.func @transform_1(%arg0: i32) -> (i32, i32) {
    %c0_i32 = arith.constant 0 : i32
    %c0_i32_0 = arith.constant 0 : i32
    %c0_i32_1 = arith.constant 0 : i32
    return %c0_i32, %c0_i32_0 : i32, i32
  }
  func.func @transform_2(%arg0: i32) -> (i32, i32) {
    %c0_i32 = arith.constant 0 : i32
    %c0_i32_0 = arith.constant 0 : i32
    %c0_i32_1 = arith.constant 0 : i32
    return %c0_i32, %c0_i32_0 : i32, i32
  }
  func.func @transform_3(%arg0: i32) -> (i32, i32) {
    %c0_i32 = arith.constant 0 : i32
    %c0_i32_0 = arith.constant 0 : i32
    %c0_i32_1 = arith.constant 0 : i32
    return %c0_i32, %c0_i32_0 : i32, i32
  }
  func.func @transform_4(%arg0: i32) -> (i32, i32) {
    %c0_i32 = arith.constant 0 : i32
    %c0_i32_0 = arith.constant 0 : i32
    %c0_i32_1 = arith.constant 0 : i32
    return %c0_i32, %c0_i32_0 : i32, i32
  }
  func.func @transform_5(%arg0: i32) -> (i32, i32) {
    %c0_i32 = arith.constant 0 : i32
    %c0_i32_0 = arith.constant 0 : i32
    return %arg0, %c0_i32 : i32, i32
  }
}

</mosaic_0001>

<bundles_post_ra>
// kernel: tpu_custom_call.1
= control target key start
LH: loop header
LB: loop body
LE: loop exit
PB: predicated region body
PF: predicated region fallthrough
CT: control target
= control target key end

     0   :  { %10 = vsyncpa [#allocation3], 0  ;;  %s722_s0 = inlined_call_operand.hbm [shape: bf16[16,128], index: 0, kind: input, shape index: {}]   ;;  %s723_s1 = inlined_call_operand.hbm [shape: f32[3,128], index: 1, kind: input, shape index: {}]   ;;  %s724_s2 = inlined_call_operand.hbm [shape: bf16[128,128], index: 2, kind: input, shape index: {}]   ;;  %s725_s3 = inlined_call_operand.hbm [shape: bf16[128,128], index: 3, kind: input, shape index: {}]   ;;  %s726_s4 = inlined_call_operand.hbm [shape: bf16[128,128], index: 4, kind: input, shape index: {}]   ;;  %s727_s5 = inlined_call_operand.hbm [shape: f32[16,128], index: 5, kind: output, shape index: {}]  }
   0x1   :  { %11 = vsyncpa [#allocation6], 0 }
   0x2   :  { %12 = vsyncpa [#allocation9], 0  ;;  %s32_s20 = sshll.u32 %s723_s1, 4  ;;  %s33_s20 = int_to_ptr.hbm [resolvable:$true] %s32_s20 }
   0x3   :  { %13 = vsyncpa [#allocation4], 0  ;;  %s664_s21 = smov [#allocation5]   ;;  %s55_s25 = sshll.u32 %s725_s3, 4  ;;  %s56_s25 = int_to_ptr.hbm [resolvable:$true] %s55_s25 }
   0x4   :  { %s34_s22 = sshll.u32 %s664_s21, 4  ;;  %s665_s26 = smov [#allocation8]   ;;  %s35_s22 = int_to_ptr.vmem [resolvable:$true] %s34_s22 }
   0x5   :  { %37 = dma.hbm_to_vmem [thread:$0]  %s33_s20, 64, %s35_s22, [#allocation6]  }
   0x6   :  { %s57_s27 = sshll.u32 %s665_s26, 4  ;;  %s18_s30 = sshll.u32 %s722_s0, 4  ;;  %s58_s27 = int_to_ptr.vmem [resolvable:$true] %s57_s27  ;;  %s19_s30 = int_to_ptr.hbm [resolvable:$true] %s18_s30 }
   0x7   :  { %s666_s1 = smov 64   ;;  %s667_s6 = smov 4  }
   0x8   :  { %63 = dma.hbm_to_vmem [thread:$0]  %s56_s25, 1024, %s58_s27, [#allocation9], %s666_s1, %s666_s1, %s667_s6  }
   0x9   :  { %s42_s9 = sshll.u32 %s724_s2, 4  ;;  %s668_s10 = smov [#allocation2]   ;;  %s43_s9 = int_to_ptr.hbm [resolvable:$true] %s42_s9 }
   0xa   :  { %s20_s11 = sshll.u32 %s668_s10, 4  ;;  %s669_s3 = smov [#allocation7]   ;;  %s21_s11 = int_to_ptr.vmem [resolvable:$true] %s20_s11 }
   0xb   :  { %26 = dma.hbm_to_vmem [thread:$0]  %s19_s30, 128, %s21_s11, [#allocation3], %s666_s1, %s666_s1, %s667_s6  }
   0xc   :  { %s44_s12 = sshll.u32 %s669_s3, 4  ;;  %s68_s0 = sshll.u32 %s726_s4, 4  ;;  %s45_s12 = int_to_ptr.vmem [resolvable:$true] %s44_s12  ;;  %s69_s0 = int_to_ptr.hbm [resolvable:$true] %s68_s0 }
   0xd   :  { %50 = dma.hbm_to_vmem [thread:$0]  %s43_s9, 1024, %s45_s12, [#allocation6], %s666_s1, %s666_s1, %s667_s6  }
   0xe   :  { %s670_s15 = smov [#allocation10]  }
   0xf   :  { %s70_s16 = sshll.u32 %s670_s15, 4  ;;  %s71_s16 = int_to_ptr.vmem [resolvable:$true] %s70_s16 }
  0x10   :  { %76 = dma.hbm_to_vmem [thread:$0]  %s69_s0, 1024, %s71_s16, [#allocation9], %s666_s1, %s666_s1, %s667_s6  }
  0x11   :  { %656 = dma.done.wait [#allocation3], 128  }
  0x12   :  { %657 = vsyncadd [#allocation3], 4294967168 }
  0x13   :  { %658 = dma.done.wait [#allocation6], 1088  }
  0x14   :  { %659 = vsyncadd [#allocation6], 4294966208 }
  0x15   :  { %660 = dma.done.wait [#allocation9], 2048  }
  0x16   :  { %661 = vsyncadd [#allocation9], 4294965248  ;;  %v482_v0 = vld [vmem:[#allocation7 + $0x38] sm:$0xff]  ;;  %v481_v1 = vld [vmem:[#allocation7 + $0x30] sm:$0xff]  ;;  %s671_s2 = smov [#allocation11]   ;;  %s359_s19 = sshll.u32 %s727_s5, 4  ;;  %s360_s19 = int_to_ptr.hbm [resolvable:$true] %s359_s19 }
  0x17   :  { %171 = vmatpush.bf16.msra.mxu0 %v482_v0  ;;  %v490_v2 = vld [vmem:[#allocation8 + $0x38] sm:$0xff]  ;;  %v489_v3 = vld [vmem:[#allocation8 + $0x30] sm:$0xff]  ;;  %v480_v4 = vld [vmem:[#allocation7 + $0x28] sm:$0xff]  ;;  %s357_s4 = sshll.u32 %s671_s2, 4  ;;  %s672_s20 = smov 128   ;;  %s358_s4 = int_to_ptr.vmem [resolvable:$true] %s357_s4 }
  0x18   :  { %254 = vmatpush.bf16.msra.mxu1 %v490_v2  ;;  %v488_v5 = vld [vmem:[#allocation8 + $0x28] sm:$0xff]  ;;  %v479_v6 = vld [vmem:[#allocation7 + $0x20] sm:$0xff]  ;;  %v478_v8 = vld [vmem:[#allocation7 + $0x18] sm:$0xff]  ;;  %s673_s21 = smov 8  }
  0x19   :  { %v487_v7 = vld [vmem:[#allocation8 + $0x20] sm:$0xff]  ;;  %v477_v9 = vld [vmem:[#allocation7 + $0x10] sm:$0xff]  ;;  %v476_v10 = vld [vmem:[#allocation7 + $0x8] sm:$0xff] }
  0x1a   :  { %v475_v11 = vld [vmem:[#allocation7] sm:$0xff]  ;;  %v474_v12 = vld [vmem:[#allocation2] sm:$0xff]  ;;  %v484_v15 = vld [vmem:[#allocation8 + $0x8] sm:$0xff] }
  0x1b   :  { %172 = vmatpush.bf16.msra.mxu0 %v481_v1  ;;  %v486_v13 = vld [vmem:[#allocation8 + $0x18] sm:$0xff]  ;;  %v485_v14 = vld [vmem:[#allocation8 + $0x10] sm:$0xff]  ;;  %v483_v16 = vld [vmem:[#allocation8] sm:$0xff] }
  0x1c   :  { %255 = vmatpush.bf16.msra.mxu1 %v489_v3  ;;  %v498_v17 = vld [vmem:[#allocation10 + $0x38] sm:$0xff]  ;;  %v497_v18 = vld [vmem:[#allocation10 + $0x30] sm:$0xff]  ;;  %v496_v19 = vld [vmem:[#allocation10 + $0x28] sm:$0xff] }
  0x1d   :  { %337 = vmatpush.bf16.msra.mxu2 %v498_v17  ;;  %v495_v20 = vld [vmem:[#allocation10 + $0x20] sm:$0xff]  ;;  %v509_v22 = vld [vmem:[#allocation5] ss:$0 sm:$0xff]  ;;  %v493_v30 = vld [vmem:[#allocation10 + $0x10] sm:$0xff] }
  0x1e   :  { %v494_v29 = vld [vmem:[#allocation10 + $0x18] sm:$0xff]  ;;  %v492_v31 = vld [vmem:[#allocation10 + $0x8] sm:$0xff]  ;;  %v491_v32 = vld [vmem:[#allocation10] sm:$0xff] }
  0x1f   :  { %173 = vmatpush.bf16.msra.mxu0 %v480_v4  ;;  %v510_v34 = vld [vmem:[#allocation5 + $0x1] ss:$0 sm:$0xff]  ;;  %v511_v41 = vld [vmem:[#allocation5 + $0x2] ss:$0 sm:$0xff] }
  0x20   :  { %256 = vmatpush.bf16.msra.mxu1 %v488_v5 }
  0x21   :  { %338 = vmatpush.bf16.msra.mxu2 %v497_v18 }
  0x23   :  { %174 = vmatpush.bf16.msra.mxu0 %v479_v6 }
  0x24   :  { %257 = vmatpush.bf16.msra.mxu1 %v487_v7 }
  0x25   :  { %339 = vmatpush.bf16.msra.mxu2 %v496_v19 }
  0x27   :  { %175 = vmatpush.bf16.msra.mxu0 %v478_v8 }
  0x28   :  { %258 = vmatpush.bf16.msra.mxu1 %v486_v13 }
  0x29   :  { %340 = vmatpush.bf16.msra.mxu2 %v495_v20 }
  0x2b   :  { %176 = vmatpush.bf16.msra.mxu0 %v477_v9 }
  0x2c   :  { %259 = vmatpush.bf16.msra.mxu1 %v485_v14 }
  0x2d   :  { %341 = vmatpush.bf16.msra.mxu2 %v494_v29 }
  0x2f   :  { %177 = vmatpush.bf16.msra.mxu0 %v476_v10 }
  0x30   :  { %260 = vmatpush.bf16.msra.mxu1 %v484_v15 }
  0x31   :  { %342 = vmatpush.bf16.msra.mxu2 %v493_v30 }
  0x33   :  { %178 = vmatpush.bf16.msra.mxu0 %v475_v11 }
  0x34   :  { %261 = vmatpush.bf16.msra.mxu1 %v483_v16 }
  0x35   :  { %343 = vmatpush.bf16.msra.mxu2 %v492_v31 }
  0x36   :  { %179 = vmatmul.bf16.vlgmr.msra.gmra.mxu0 %v474_v12 }
  0x39   :  { %344 = vmatpush.bf16.msra.mxu2 %v491_v32 }
  0xb3   :  { %v180_v21 = vpop.f32.mrf.mxu0 }
  0xb4   :  { %v181_v23 = vadd.f32 %v509_v22, %v180_v21 }
  0xb6   :  { %v185_v26 = vmax.f32 %v181_v23, 0.0 }
  0xbb   :  { %v182_v24 = vpop.f32.mrf.mxu0 }
  0xbc   :  { %v183_v25 = vadd.f32 %v509_v22, %v182_v24 }
  0xbe   :  { %v186_v27 = vmax.f32 %v183_v25, 0.0 }
  0xc0   :  { %v187_v28 = vpack.c.bf16 %v186_v27, %v185_v26 }
  0xc2   :  { %262 = vmatmul.bf16.vlgmr.msra.gmra.mxu1 %v187_v28 }
 0x13f   :  { %v263_v33 = vpop.f32.mrf.mxu1 }
 0x140   :  { %v264_v35 = vadd.f32 %v510_v34, %v263_v33 }
 0x142   :  { %v268_v38 = vmax.f32 %v264_v35, 0.0 }
 0x147   :  { %v265_v36 = vpop.f32.mrf.mxu1 }
 0x148   :  { %v266_v37 = vadd.f32 %v510_v34, %v265_v36 }
 0x14a   :  { %v269_v39 = vmax.f32 %v266_v37, 0.0 }
 0x14c   :  { %v270_v40 = vpack.c.bf16 %v269_v39, %v268_v38 }
 0x14e   :  { %345 = vmatmul.bf16.vlgmr.msra.gmra.mxu2 %v270_v40 }
 0x1d1   :  { %v346_v42 = vpop.f32.mrf.mxu2 }
 0x1d2   :  { %v347_v43 = vadd.f32 %v511_v41, %v346_v42 }
 0x1d4   :  { %351 = vst [vmem:[#allocation11] sm:$0xff] %v347_v43 }
 0x1d9   :  { %v348_v44 = vpop.f32.mrf.mxu2 }
 0x1da   :  { %v349_v45 = vadd.f32 %v511_v41, %v348_v44 }
 0x1dc   :  { %352 = vst [vmem:[#allocation11 + $0x8] sm:$0xff] %v349_v45 }
 0x1dd   :  { %365 = dma.vmem_to_hbm [thread:$0]  %s358_s4, 256, %s360_s19, [#allocation4], %s672_s20, %s672_s20, %s673_s21  }
 0x1de   :  { %662 = dma.done.wait [#allocation4], 256  }
 0x1df   :  { %663 = vsyncadd [#allocation4], 4294967040 }
 0x1e0   :  { %370 = vsyncpa [#allocation3], 1 }
 0x1e1   :  { %371 = vsyncpa [#allocation6], 1 }
 0x1e2   :  { %372 = vsyncpa [#allocation9], 1 }
 0x1e3   :  { %373 = vsyncpa [#allocation4], 1 }

// kernel: tpu_custom_call.1
= control target key start
LH: loop header
LB: loop body
LE: loop exit
PB: predicated region body
PF: predicated region fallthrough
CT: control target
= control target key end

     0   :  { %10 = vsyncpa [#allocation3], 0  ;;  %s722_s0 = inlined_call_operand.hbm [shape: bf16[16,128], index: 0, kind: input, shape index: {}]   ;;  %s723_s1 = inlined_call_operand.hbm [shape: f32[3,128], index: 1, kind: input, shape index: {}]   ;;  %s724_s2 = inlined_call_operand.hbm [shape: bf16[128,128], index: 2, kind: input, shape index: {}]   ;;  %s725_s3 = inlined_call_operand.hbm [shape: bf16[128,128], index: 3, kind: input, shape index: {}]   ;;  %s726_s4 = inlined_call_operand.hbm [shape: bf16[128,128], index: 4, kind: input, shape index: {}]   ;;  %s727_s5 = inlined_call_operand.hbm [shape: f32[16,128], index: 5, kind: output, shape index: {}]  }
   0x1   :  { %11 = vsyncpa [#allocation6], 0 }
   0x2   :  { %12 = vsyncpa [#allocation9], 0  ;;  %s32_s20 = sshll.u32 %s723_s1, 4  ;;  %s33_s20 = int_to_ptr.hbm [resolvable:$true] %s32_s20 }
   0x3   :  { %13 = vsyncpa [#allocation4], 0  ;;  %s664_s21 = smov [#allocation5]   ;;  %s55_s25 = sshll.u32 %s725_s3, 4  ;;  %s56_s25 = int_to_ptr.hbm [resolvable:$true] %s55_s25 }
   0x4   :  { %s34_s22 = sshll.u32 %s664_s21, 4  ;;  %s665_s26 = smov [#allocation8]   ;;  %s35_s22 = int_to_ptr.vmem [resolvable:$true] %s34_s22 }
   0x5   :  { %37 = dma.hbm_to_vmem [thread:$0]  %s33_s20, 64, %s35_s22, [#allocation6]  }
   0x6   :  { %s57_s27 = sshll.u32 %s665_s26, 4  ;;  %s18_s30 = sshll.u32 %s722_s0, 4  ;;  %s58_s27 = int_to_ptr.vmem [resolvable:$true] %s57_s27  ;;  %s19_s30 = int_to_ptr.hbm [resolvable:$true] %s18_s30 }
   0x7   :  { %s666_s1 = smov 64   ;;  %s667_s6 = smov 4  }
   0x8   :  { %63 = dma.hbm_to_vmem [thread:$0]  %s56_s25, 1024, %s58_s27, [#allocation9], %s666_s1, %s666_s1, %s667_s6  }
   0x9   :  { %s42_s9 = sshll.u32 %s724_s2, 4  ;;  %s668_s10 = smov [#allocation2]   ;;  %s43_s9 = int_to_ptr.hbm [resolvable:$true] %s42_s9 }
   0xa   :  { %s20_s11 = sshll.u32 %s668_s10, 4  ;;  %s669_s3 = smov [#allocation7]   ;;  %s21_s11 = int_to_ptr.vmem [resolvable:$true] %s20_s11 }
   0xb   :  { %26 = dma.hbm_to_vmem [thread:$0]  %s19_s30, 128, %s21_s11, [#allocation3], %s666_s1, %s666_s1, %s667_s6  }
   0xc   :  { %s44_s12 = sshll.u32 %s669_s3, 4  ;;  %s68_s0 = sshll.u32 %s726_s4, 4  ;;  %s45_s12 = int_to_ptr.vmem [resolvable:$true] %s44_s12  ;;  %s69_s0 = int_to_ptr.hbm [resolvable:$true] %s68_s0 }
   0xd   :  { %50 = dma.hbm_to_vmem [thread:$0]  %s43_s9, 1024, %s45_s12, [#allocation6], %s666_s1, %s666_s1, %s667_s6  }
   0xe   :  { %s670_s15 = smov [#allocation10]  }
   0xf   :  { %s70_s16 = sshll.u32 %s670_s15, 4  ;;  %s71_s16 = int_to_ptr.vmem [resolvable:$true] %s70_s16 }
  0x10   :  { %76 = dma.hbm_to_vmem [thread:$0]  %s69_s0, 1024, %s71_s16, [#allocation9], %s666_s1, %s666_s1, %s667_s6  }
  0x11   :  { %656 = dma.done.wait [#allocation3], 128  }
  0x12   :  { %657 = vsyncadd [#allocation3], 4294967168 }
  0x13   :  { %658 = dma.done.wait [#allocation6], 1088  }
  0x14   :  { %659 = vsyncadd [#allocation6], 4294966208 }
  0x15   :  { %660 = dma.done.wait [#allocation9], 2048  }
  0x16   :  { %661 = vsyncadd [#allocation9], 4294965248  ;;  %v482_v0 = vld [vmem:[#allocation7 + $0x38] sm:$0xff]  ;;  %v481_v1 = vld [vmem:[#allocation7 + $0x30] sm:$0xff]  ;;  %s671_s2 = smov [#allocation11]   ;;  %s359_s19 = sshll.u32 %s727_s5, 4  ;;  %s360_s19 = int_to_ptr.hbm [resolvable:$true] %s359_s19 }
  0x17   :  { %171 = vmatpush.bf16.msra.mxu0 %v482_v0  ;;  %v490_v2 = vld [vmem:[#allocation8 + $0x38] sm:$0xff]  ;;  %v489_v3 = vld [vmem:[#allocation8 + $0x30] sm:$0xff]  ;;  %v480_v4 = vld [vmem:[#allocation7 + $0x28] sm:$0xff]  ;;  %s357_s4 = sshll.u32 %s671_s2, 4  ;;  %s672_s20 = smov 128   ;;  %s358_s4 = int_to_ptr.vmem [resolvable:$true] %s357_s4 }
  0x18   :  { %254 = vmatpush.bf16.msra.mxu1 %v490_v2  ;;  %v488_v5 = vld [vmem:[#allocation8 + $0x28] sm:$0xff]  ;;  %v479_v6 = vld [vmem:[#allocation7 + $0x20] sm:$0xff]  ;;  %v478_v8 = vld [vmem:[#allocation7 + $0x18] sm:$0xff]  ;;  %s673_s21 = smov 8  }
  0x19   :  { %v487_v7 = vld [vmem:[#allocation8 + $0x20] sm:$0xff]  ;;  %v477_v9 = vld [vmem:[#allocation7 + $0x10] sm:$0xff]  ;;  %v476_v10 = vld [vmem:[#allocation7 + $0x8] sm:$0xff] }
  0x1a   :  { %v475_v11 = vld [vmem:[#allocation7] sm:$0xff]  ;;  %v474_v12 = vld [vmem:[#allocation2] sm:$0xff]  ;;  %v484_v15 = vld [vmem:[#allocation8 + $0x8] sm:$0xff] }
  0x1b   :  { %172 = vmatpush.bf16.msra.mxu0 %v481_v1  ;;  %v486_v13 = vld [vmem:[#allocation8 + $0x18] sm:$0xff]  ;;  %v485_v14 = vld [vmem:[#allocation8 + $0x10] sm:$0xff]  ;;  %v483_v16 = vld [vmem:[#allocation8] sm:$0xff] }
  0x1c   :  { %255 = vmatpush.bf16.msra.mxu1 %v489_v3  ;;  %v498_v17 = vld [vmem:[#allocation10 + $0x38] sm:$0xff]  ;;  %v497_v18 = vld [vmem:[#allocation10 + $0x30] sm:$0xff]  ;;  %v496_v19 = vld [vmem:[#allocation10 + $0x28] sm:$0xff] }
  0x1d   :  { %337 = vmatpush.bf16.msra.mxu2 %v498_v17  ;;  %v495_v20 = vld [vmem:[#allocation10 + $0x20] sm:$0xff]  ;;  %v509_v22 = vld [vmem:[#allocation5] ss:$0 sm:$0xff]  ;;  %v493_v30 = vld [vmem:[#allocation10 + $0x10] sm:$0xff] }
  0x1e   :  { %v494_v29 = vld [vmem:[#allocation10 + $0x18] sm:$0xff]  ;;  %v492_v31 = vld [vmem:[#allocation10 + $0x8] sm:$0xff]  ;;  %v491_v32 = vld [vmem:[#allocation10] sm:$0xff] }
  0x1f   :  { %173 = vmatpush.bf16.msra.mxu0 %v480_v4  ;;  %v510_v34 = vld [vmem:[#allocation5 + $0x1] ss:$0 sm:$0xff]  ;;  %v511_v41 = vld [vmem:[#allocation5 + $0x2] ss:$0 sm:$0xff] }
  0x20   :  { %256 = vmatpush.bf16.msra.mxu1 %v488_v5 }
  0x21   :  { %338 = vmatpush.bf16.msra.mxu2 %v497_v18 }
  0x23   :  { %174 = vmatpush.bf16.msra.mxu0 %v479_v6 }
  0x24   :  { %257 = vmatpush.bf16.msra.mxu1 %v487_v7 }
  0x25   :  { %339 = vmatpush.bf16.msra.mxu2 %v496_v19 }
  0x27   :  { %175 = vmatpush.bf16.msra.mxu0 %v478_v8 }
  0x28   :  { %258 = vmatpush.bf16.msra.mxu1 %v486_v13 }
  0x29   :  { %340 = vmatpush.bf16.msra.mxu2 %v495_v20 }
  0x2b   :  { %176 = vmatpush.bf16.msra.mxu0 %v477_v9 }
  0x2c   :  { %259 = vmatpush.bf16.msra.mxu1 %v485_v14 }
  0x2d   :  { %341 = vmatpush.bf16.msra.mxu2 %v494_v29 }
  0x2f   :  { %177 = vmatpush.bf16.msra.mxu0 %v476_v10 }
  0x30   :  { %260 = vmatpush.bf16.msra.mxu1 %v484_v15 }
  0x31   :  { %342 = vmatpush.bf16.msra.mxu2 %v493_v30 }
  0x33   :  { %178 = vmatpush.bf16.msra.mxu0 %v475_v11 }
  0x34   :  { %261 = vmatpush.bf16.msra.mxu1 %v483_v16 }
  0x35   :  { %343 = vmatpush.bf16.msra.mxu2 %v492_v31 }
  0x36   :  { %179 = vmatmul.bf16.vlgmr.msra.gmra.mxu0 %v474_v12 }
  0x39   :  { %344 = vmatpush.bf16.msra.mxu2 %v491_v32 }
  0xb3   :  { %v180_v21 = vpop.f32.mrf.mxu0 }
  0xb4   :  { %v181_v23 = vadd.f32 %v509_v22, %v180_v21 }
  0xb6   :  { %v185_v26 = vmax.f32 %v181_v23, 0.0 }
  0xbb   :  { %v182_v24 = vpop.f32.mrf.mxu0 }
  0xbc   :  { %v183_v25 = vadd.f32 %v509_v22, %v182_v24 }
  0xbe   :  { %v186_v27 = vmax.f32 %v183_v25, 0.0 }
  0xc0   :  { %v187_v28 = vpack.c.bf16 %v186_v27, %v185_v26 }
  0xc2   :  { %262 = vmatmul.bf16.vlgmr.msra.gmra.mxu1 %v187_v28 }
 0x13f   :  { %v263_v33 = vpop.f32.mrf.mxu1 }
 0x140   :  { %v264_v35 = vadd.f32 %v510_v34, %v263_v33 }
 0x142   :  { %v268_v38 = vmax.f32 %v264_v35, 0.0 }
 0x147   :  { %v265_v36 = vpop.f32.mrf.mxu1 }
 0x148   :  { %v266_v37 = vadd.f32 %v510_v34, %v265_v36 }
 0x14a   :  { %v269_v39 = vmax.f32 %v266_v37, 0.0 }
 0x14c   :  { %v270_v40 = vpack.c.bf16 %v269_v39, %v268_v38 }
 0x14e   :  { %345 = vmatmul.bf16.vlgmr.msra.gmra.mxu2 %v270_v40 }
 0x1d1   :  { %v346_v42 = vpop.f32.mrf.mxu2 }
 0x1d2   :  { %v347_v43 = vadd.f32 %v511_v41, %v346_v42 }
 0x1d4   :  { %351 = vst [vmem:[#allocation11] sm:$0xff] %v347_v43 }
 0x1d9   :  { %v348_v44 = vpop.f32.mrf.mxu2 }
 0x1da   :  { %v349_v45 = vadd.f32 %v511_v41, %v348_v44 }
 0x1dc   :  { %352 = vst [vmem:[#allocation11 + $0x8] sm:$0xff] %v349_v45 }
 0x1dd   :  { %365 = dma.vmem_to_hbm [thread:$0]  %s358_s4, 256, %s360_s19, [#allocation4], %s672_s20, %s672_s20, %s673_s21  }
 0x1de   :  { %662 = dma.done.wait [#allocation4], 256  }
 0x1df   :  { %663 = vsyncadd [#allocation4], 4294967040 }
 0x1e0   :  { %370 = vsyncpa [#allocation3], 1 }
 0x1e1   :  { %371 = vsyncpa [#allocation6], 1 }
 0x1e2   :  { %372 = vsyncpa [#allocation9], 1 }
 0x1e3   :  { %373 = vsyncpa [#allocation4], 1 }

</bundles_post_ra>
